<compile_context>
chip_gen: v5e
topology: v5e:2x2
jax: 0.10.0
libtpu: 0.0.40
codegen_flags: <defaults>
</compile_context>

<pallas_src>
import functools

import numpy as np
import jax
import jax.numpy as jnp
from jax.experimental import pallas as pl
from jax.experimental.pallas import tpu as pltpu

# ---------------- synthetic SMPL dimensions ----------------
V = 512        # vertices (small stand-in for 6890)
NJ = 24        # joints
NB = 10        # shape betas
P = 207        # pose-blend basis = (NJ-1)*9

SMPL_PARENTS = np.array([-1, 0, 0, 0, 1, 2, 3, 4, 5, 6, 7, 8,
                         9, 9, 9, 12, 13, 14, 16, 17, 18, 19, 20, 21],
                        dtype=np.int32)

# whole-array (no grid) BlockSpecs
_VMEM = pl.BlockSpec(memory_space=pltpu.MemorySpace.VMEM)
_SMEM = pl.BlockSpec(memory_space=pltpu.MemorySpace.SMEM)


# ---------------- init-time shape kernel (betas stage, runs ONCE per server) ----------
def _shape_kernel(vt_ref, sd_ref, bkron_ref, jregT_ref, vshaped_ref, jtrT_ref):
    # shape blendshapes, channel-major: (3, 3*NB)bf16 @ (3*NB, V)bf16 -> (3, V)f32
    vs = vt_ref[...] + jnp.dot(bkron_ref[...], sd_ref[...],
                               preferred_element_type=jnp.float32)
    vshaped_ref[...] = vs
    # rest-joint regression: J^T(3,24) = v_shaped_cm(3,V) @ Jreg^T(V,24)
    # (j_regressor_T kept f32: init-only, joint accuracy is the most sensitive output)
    jtrT_ref[...] = jnp.dot(vs, jregT_ref[...], preferred_element_type=jnp.float32)


def pallas_shape_and_joints(v_template_cm, shapedirs_cm, betas_kron, jreg_T):
    return pl.pallas_call(
        _shape_kernel,
        out_shape=(jax.ShapeDtypeStruct((3, V), jnp.float32),
                   jax.ShapeDtypeStruct((3, NJ), jnp.float32)),
        in_specs=[_VMEM, _VMEM, _VMEM, _VMEM],
        out_specs=(_VMEM, _VMEM),
    )(v_template_cm, shapedirs_cm, betas_kron, jreg_T)


# ---------------- per-frame fused kernel: pose blend + kinematic chain + LBS ----------
def _pose_lbs_kernel(rot_ref, jtr_ref, pkron_ref, vshaped_ref, pd_ref, lbs_ref,
                     verts_ref, A_ref, pj_ref):
    # (1) pose blendshapes (MXU, bf16 in / f32 acc): (3, 3P) @ (3P, V) -> (3, V)
    v_posed = vshaped_ref[...] + jnp.dot(pkron_ref[...], pd_ref[...],
                                         preferred_element_type=jnp.float32)
    px = v_posed[0:1, :]
    py = v_posed[1:2, :]
    pz = v_posed[2:3, :]

    zero = jnp.float32(0.0)
    one = jnp.float32(1.0)

    # (2) 24-step kinematic chain + relative transforms + skinning, fused in one
    #     unrolled pass per joint.  Chain math is pure scalar (SMEM) arithmetic
    #     (parents are static python ints); skinning is scalar*vector VPU FMAs
    #     on lane-dense (1, V) rows.
    joints = [[jtr_ref[3 * i + c] for c in range(3)] for i in range(NJ)]
    G_R = [None] * NJ                     # global rotations (9 scalars, row-major)
    G_t = [None] * NJ                     # global translations (3 scalars)
    vx = vy = vz = None
    for i in range(NJ):
        Ri = [rot_ref[9 * i + k] for k in range(9)]
        ji = joints[i]
        if i == 0:
            Rg = Ri
            tg = ji
        else:
            par = int(SMPL_PARENTS[i])
            Rp, tp, jp = G_R[par], G_t[par], joints[par]
            trel = [ji[c] - jp[c] for c in range(3)]
            Rg = [Rp[3 * r + 0] * Ri[c] + Rp[3 * r + 1] * Ri[3 + c]
                  + Rp[3 * r + 2] * Ri[6 + c]
                  for r in range(3) for c in range(3)]
            tg = [Rp[3 * r + 0] * trel[0] + Rp[3 * r + 1] * trel[1]
                  + Rp[3 * r + 2] * trel[2] + tp[r]
                  for r in range(3)]
        G_R[i] = Rg
        G_t[i] = tg

        # relative bone transform A_i = [Rg | tg - Rg @ j_i ; 0 0 0 1]
        At = [tg[r] - (Rg[3 * r + 0] * ji[0] + Rg[3 * r + 1] * ji[1]
                       + Rg[3 * r + 2] * ji[2])
              for r in range(3)]
        for r in range(3):
            A_ref[16 * i + 4 * r + 0] = Rg[3 * r + 0]
            A_ref[16 * i + 4 * r + 1] = Rg[3 * r + 1]
            A_ref[16 * i + 4 * r + 2] = Rg[3 * r + 2]
            A_ref[16 * i + 4 * r + 3] = At[r]
        A_ref[16 * i + 12] = zero
        A_ref[16 * i + 13] = zero
        A_ref[16 * i + 14] = zero
        A_ref[16 * i + 15] = one
        pj_ref[3 * i + 0] = tg[0]
        pj_ref[3 * i + 1] = tg[1]
        pj_ref[3 * i + 2] = tg[2]

        # (3) skinning: verts += w_i * (Rg @ p + At)   (== (sum_i w_i A_i) p)
        w = lbs_ref[i:i + 1, :]                                      # (1, V) f32
        tx = Rg[0] * px + Rg[1] * py + Rg[2] * pz + At[0]
        ty = Rg[3] * px + Rg[4] * py + Rg[5] * pz + At[1]
        tz = Rg[6] * px + Rg[7] * py + Rg[8] * pz + At[2]
        if vx is None:
            vx = w * tx
            vy = w * ty
            vz = w * tz
        else:
            vx = vx + w * tx
            vy = vy + w * ty
            vz = vz + w * tz

    # three direct lane-dense row stores (no sublane concatenate)
    verts_ref[0:1, :] = vx
    verts_ref[1:2, :] = vy
    verts_ref[2:3, :] = vz


def pallas_pose_lbs(rot_flat, jtrs_flat, pose_kron, v_shaped_cm, posedirs_cm, lbs_T):
    return pl.pallas_call(
        _pose_lbs_kernel,
        out_shape=(jax.ShapeDtypeStruct((3, V), jnp.float32),        # verts (channel-major)
                   jax.ShapeDtypeStruct((NJ * 16,), jnp.float32),    # A, 24x4x4 row-major
                   jax.ShapeDtypeStruct((NJ * 3,), jnp.float32)),    # posed joints
        in_specs=[_SMEM, _SMEM, _VMEM, _VMEM, _VMEM, _VMEM],
        out_specs=(_VMEM, _SMEM, _SMEM),
    )(rot_flat, jtrs_flat, pose_kron, v_shaped_cm, posedirs_cm, lbs_T)


# ---------------- glue (tiny vectorized pieces kept in the same jitted program) --------
def batch_rodrigues(rot_vecs, eps=1e-8):
    # eps added to components before the norm to match the reference SMPL impl.
    angle = jnp.linalg.norm(rot_vecs + eps, axis=1, keepdims=True)        # (NJ,1)
    rot_dir = rot_vecs / angle
    cos = jnp.cos(angle)[:, None]                                         # (NJ,1,1)
    sin = jnp.sin(angle)[:, None]
    rx, ry, rz = rot_dir[:, 0], rot_dir[:, 1], rot_dir[:, 2]
    zeros = jnp.zeros_like(rx)
    K = jnp.stack([zeros, -rz, ry, rz, zeros, -rx, -ry, rx, zeros],
                  axis=1).reshape(-1, 3, 3)
    ident = jnp.eye(3, dtype=jnp.float32)[None]
    return ident + sin * K + (1.0 - cos) * jnp.einsum('nij,njk->nik', K, K)


def batch_rigid_transform(rot_mats, joints, parents):
    # pure-JAX reference path only (use_pallas=False)
    rel_joints = joints.at[1:].add(-joints[parents[1:]])
    top = jnp.concatenate([rot_mats, rel_joints[:, :, None]], axis=-1)            # (NJ,3,4)
    bottom = jnp.broadcast_to(jnp.array([[0., 0., 0., 1.]], jnp.float32), (NJ, 1, 4))
    transforms_mat = jnp.concatenate([top, bottom], axis=1)                        # (NJ,4,4)
    chain = [transforms_mat[0]]
    for i in range(1, NJ):
        chain.append(chain[int(parents[i])] @ transforms_mat[i])
    transforms = jnp.stack(chain, axis=0)                                          # (NJ,4,4)
    posed_joints = transforms[:, :3, 3]
    joints_h = jnp.concatenate([joints, jnp.zeros((NJ, 1), jnp.float32)], axis=-1)
    correction = jnp.einsum('nij,nj->ni', transforms, joints_h)
    rel_transforms = transforms.at[:, :, 3].add(-correction)
    return posed_joints, rel_transforms


def _kron3(vec):
    """kron(eye(3), vec): (3, 3*len(vec)) with [k, k*L + l] = vec[l]."""
    eye3 = jnp.eye(3, dtype=jnp.float32)
    return (eye3[:, :, None] * vec[None, None, :]).reshape(3, 3 * vec.shape[0])


@functools.partial(jax.jit, static_argnames=('use_pallas',))
def _forward_impl(p, cache, betas, poses, Rh, Th, use_pallas=True):
    """Entire per-frame forward (Rodrigues glue + one fused pallas_call + packaging)."""
    full_pose = jnp.concatenate([Rh.reshape(-1), poses.reshape(-1)]).reshape(NJ, 3)
    rot_mats = batch_rodrigues(full_pose)                                          # (NJ,3,3)

    eye3 = jnp.eye(3, dtype=jnp.float32)
    pf = (rot_mats[1:] - eye3).reshape(P)
    pf_q = pf.astype(jnp.bfloat16).astype(jnp.float32)

    if use_pallas:
        pose_kron = _kron3(pf_q).astype(jnp.bfloat16)                    # (3, 3*P)
        rot_flat = rot_mats.reshape(NJ * 9)
        verts_cm, a_flat, pj_flat = pallas_pose_lbs(
            rot_flat, cache['jtrs_flat'], pose_kron,
            cache['v_shaped_cm'], p['posedirs_cm'], p['lbs_weights_T'])
        verts = verts_cm.T                                               # (V, 3)
        A = a_flat.reshape(NJ, 4, 4)
        posed_joints = pj_flat.reshape(NJ, 3)
        jtrs = cache['jtrs']
    else:  # pure-JAX reference (original SMPL formulation, vertex-major)
        b_q = betas.reshape(NB).astype(jnp.bfloat16).astype(jnp.float32)
        v_shaped = p['v_template'] + jnp.einsum('vkl,l->vk', p['shapedirs_vkl'], b_q)
        jtrs = p['J_regressor'] @ v_shaped
        posed_joints, A = batch_rigid_transform(rot_mats, jtrs, SMPL_PARENTS)
        a_flat = A.reshape(NJ, 16)
        v_posed = v_shaped + jnp.einsum('vkp,p->vk', p['posedirs_vkp'], pf_q)
        T = (p['lbs_weights'] @ a_flat).reshape(V, 4, 4)
        verts = jnp.einsum('vij,vj->vi', T[:, :3, :3], v_posed) + T[:, :3, 3]

    rots_full = rot_mats[None]                       # (1, 24, 3, 3)
    rots = rots_full.at[0, 0].set(jnp.eye(3, dtype=jnp.float32))
    return {
        'smpl_verts': verts[None] + Th[:, None, :],  # (1, V, 3)
        'smpl_jnts': posed_joints[None] + Th[:, None, :],   # (1, 24, 3)
        'smpl_tfs': A[None],                         # (1, 24, 4, 4)
        'smpl_Jtrs': jtrs[None],                     # (1, 24, 3)
        'smpl_rots': rots,
        'smpl_rots_full': rots_full,
    }


def _make_synthetic_smpl_params(key):
    k1, k2, k3, k4, k5 = jax.random.split(key, 5)
    v_template = 0.1 * jax.random.normal(k1, (V, 3), jnp.float32)
    shapedirs = 0.01 * jax.random.normal(k2, (V, 3, NB), jnp.float32)
    posedirs = 0.01 * jax.random.normal(k3, (V, 3, P), jnp.float32)
    j_regressor = jax.nn.softmax(jax.random.normal(k4, (NJ, V), jnp.float32), axis=-1)
    lbs_weights = jax.nn.softmax(2.0 * jax.random.normal(k5, (V, NJ), jnp.float32), axis=-1)

    # channel-major bf16 blend-shape streams for the kernels: [k*L + l, v]
    shapedirs_cm = jnp.transpose(shapedirs, (1, 2, 0)).reshape(3 * NB, V).astype(jnp.bfloat16)
    posedirs_cm = jnp.transpose(posedirs, (1, 2, 0)).reshape(3 * P, V).astype(jnp.bfloat16)

    return {
        # kernel (channel-major) layout
        'v_template_cm': v_template.T,                                   # (3, V)  f32
        'shapedirs_cm': shapedirs_cm,                                    # (30, V) bf16
        'posedirs_cm': posedirs_cm,                                      # (621,V) bf16
        'j_regressor_T': j_regressor.T,                                  # (V, 24) f32
        'lbs_weights_T': lbs_weights.T,                                  # (24, V) f32
        # reference (vertex-major) layout, dequantized from the same bf16 values so
        # the pallas/reference comparison checks the kernels, not quantization
        'v_template': v_template,                                        # (V, 3)
        'shapedirs_vkl': jnp.transpose(
            shapedirs_cm.astype(jnp.float32).reshape(3, NB, V), (2, 0, 1)),   # (V,3,NB)
        'posedirs_vkp': jnp.transpose(
            posedirs_cm.astype(jnp.float32).reshape(3, P, V), (2, 0, 1)),     # (V,3,P)
        'J_regressor': j_regressor,                                      # (24, V)
        'lbs_weights': lbs_weights,                                      # (V, 24)
    }


# ---------------- SMPLServer (JAX / Pallas version) ----------------
class SMPLServer:
    def __init__(self, pid, gender='neutral', betas=None):
        if betas is None:
            raise ValueError('SMPL Server should specify the person identity '
                             'with the shape(beta) information')
        self.pid = pid
        self.gender = gender
        self.betas = jnp.asarray(betas, jnp.float32).reshape(1, -1)
        self.params = _make_synthetic_smpl_params(jax.random.PRNGKey(0))
        self.bone_parents = SMPL_PARENTS.copy()
        self.bone_parents[0] = -1
        self.bone_ids = [[int(self.bone_parents[i]), i] for i in range(NJ)]

        # betas-dependent shape stage hoisted out of forward(): run once and cache
        b_q = self.betas.reshape(NB).astype(jnp.bfloat16).astype(jnp.float32)
        betas_kron = _kron3(b_q).astype(jnp.bfloat16)                    # (3, 3*NB)
        v_shaped_cm, jtrT = pallas_shape_and_joints(
            self.params['v_template_cm'], self.params['shapedirs_cm'],
            betas_kron, self.params['j_regressor_T'])
        jtrs = jtrT.T                                                    # (NJ, 3)
        self.cache = {'v_shaped_cm': v_shaped_cm,
                      'jtrs': jtrs,
                      'jtrs_flat': jtrs.reshape(-1)}

        self.c = self.canonical()
        self.c_verts = self.c['c_verts']
        self.c_tfs = self.c['c_tfs']
        tpose = self.Tpose()
        self.T_verts = tpose['smpl_verts']
        self.t_Jtrs = tpose['smpl_Jtrs']
        self.cc = self.canonical_centered()

    def Tpose(self):
        z = jnp.zeros((1, 3), jnp.float32)
        return self.forward(jnp.zeros((1, 69), jnp.float32), z, z)

    def canonical(self):
        poses_c = np.zeros((1, 69), dtype=np.float32)
        poses_c[0, 2] = np.pi / 4
        poses_c[0, 5] = -np.pi / 4
        z = jnp.zeros((1, 3), jnp.float32)
        out = self.forward(jnp.asarray(poses_c), z, z)
        return {'c_verts': out['smpl_verts'], 'c_jnts': out['smpl_jnts'],
                'c_tfs': out['smpl_tfs'][0],
                'c_tfs_inv': jnp.linalg.inv(out['smpl_tfs'][0]),
                'c_Jtrs': out['smpl_Jtrs']}

    def canonical_centered(self):
        c_center = jnp.mean(self.c_verts[0], axis=0)
        cc_verts = self.c_verts - c_center
        return {'c_center': c_center, 'cc_verts': cc_verts,
                'cc_coord_max': cc_verts.max(), 'cc_coord_min': cc_verts.min()}

    def t_Jtrs_norm(self, cc=None):
        if cc is None:
            cc = self.cc
        padding = (cc['cc_coord_max'] - cc['cc_coord_min']) * 0.05
        tn = self.t_Jtrs - cc['c_center']
        tn = (tn - cc['cc_coord_min'] + padding) / (cc['cc_coord_max'] - cc['cc_coord_min']) / 1.1
        tn = (tn - 0.5) * 2.0
        return tn

    def forward(self, poses, Rh, Th, use_pallas=True):
        """poses: [1,69], Rh: [1,3], Th: [1,3]"""
        poses = jnp.asarray(poses, jnp.float32).reshape(1, -1)
        Rh = jnp.asarray(Rh, jnp.float32).reshape(1, -1)
        Th = jnp.asarray(Th, jnp.float32).reshape(1, -1)
        return _forward_impl(self.params, self.cache, self.betas, poses, Rh, Th,
                             use_pallas=use_pallas)


if __name__ == "__main__":
    key = jax.random.PRNGKey(0)
    kb, kp, kr, kt = jax.random.split(key, 4)
    betas = np.asarray(0.5 * jax.random.normal(kb, (1, NB), jnp.float32))

    server = SMPLServer(pid=0, gender='neutral', betas=betas)

    poses = 0.3 * jax.random.normal(kp, (1, 69), jnp.float32)
    Rh = 0.2 * jax.random.normal(kr, (1, 3), jnp.float32)
    Th = 0.1 * jax.random.normal(kt, (1, 3), jnp.float32)

    out = server.forward(poses, Rh, Th, use_pallas=True)
    jax.block_until_ready(out['smpl_verts'])

    ref = server.forward(poses, Rh, Th, use_pallas=False)
    for name in ('smpl_verts', 'smpl_jnts', 'smpl_tfs', 'smpl_Jtrs'):
        np.testing.assert_allclose(np.asarray(out[name]), np.asarray(ref[name]),
                                   rtol=5e-3, atol=5e-3)

    print("KERNEL_OK")
</pallas_src>

<mosaic_0001>
module attributes {stable_mosaic.version = 11 : i64} {
  func.func @_shape_kernel(%arg0: memref<3x512xf32, #tpu.memory_space<vmem>>, %arg1: memref<30x512xbf16, #tpu.memory_space<vmem>>, %arg2: memref<3x30xbf16, #tpu.memory_space<vmem>>, %arg3: memref<512x24xf32, #tpu.memory_space<vmem>>, %arg4: memref<3x512xf32, #tpu.memory_space<vmem>>, %arg5: memref<3x24xf32, #tpu.memory_space<vmem>>) attributes {dimension_semantics = [], scalar_prefetch = 0 : i64, scratch_operands = 0 : i64, tpu.core_type = #tpu.core_type<tc>} {
    %c0 = arith.constant 0 : index
    %c0_0 = arith.constant 0 : index
    %0 = vector.load %arg0[%c0, %c0_0] : memref<3x512xf32, #tpu.memory_space<vmem>>, vector<3x512xf32>
    %c0_1 = arith.constant 0 : index
    %c0_2 = arith.constant 0 : index
    %1 = vector.load %arg2[%c0_1, %c0_2] : memref<3x30xbf16, #tpu.memory_space<vmem>>, vector<3x30xbf16>
    %c0_3 = arith.constant 0 : index
    %c0_4 = arith.constant 0 : index
    %2 = vector.load %arg1[%c0_3, %c0_4] : memref<30x512xbf16, #tpu.memory_space<vmem>>, vector<30x512xbf16>
    %cst = arith.constant dense<0.000000e+00> : vector<3x512xf32>
    %3 = tpu.matmul %1, %2, %cst {dimension_numbers = #tpu.dot_dimension_numbers<[1], [0], [0], [1], [0, 0, 1, 1], [], []>} : vector<3x30xbf16>, vector<30x512xbf16>, vector<3x512xf32> -> vector<3x512xf32>
    %4 = arith.addf %0, %3 : vector<3x512xf32>
    %c0_5 = arith.constant 0 : index
    %c0_6 = arith.constant 0 : index
    %5 = vector.load %arg4[%c0_5, %c0_6] : memref<3x512xf32, #tpu.memory_space<vmem>>, vector<3x512xf32>
    tpu.vector_store %arg4[%c0_5, %c0_6], %4 {strides = array<i32>} : memref<3x512xf32, #tpu.memory_space<vmem>>, vector<3x512xf32>,
    %c0_7 = arith.constant 0 : index
    %c0_8 = arith.constant 0 : index
    %6 = vector.load %arg3[%c0_7, %c0_8] : memref<512x24xf32, #tpu.memory_space<vmem>>, vector<512x24xf32>
    %cst_9 = arith.constant dense<0.000000e+00> : vector<3x24xf32>
    %7 = tpu.matmul %4, %6, %cst_9 {dimension_numbers = #tpu.dot_dimension_numbers<[1], [0], [0], [1], [0, 0, 1, 1], [], []>} : vector<3x512xf32>, vector<512x24xf32>, vector<3x24xf32> -> vector<3x24xf32>
    %c0_10 = arith.constant 0 : index
    %c0_11 = arith.constant 0 : index
    %8 = vector.load %arg5[%c0_10, %c0_11] : memref<3x24xf32, #tpu.memory_space<vmem>>, vector<3x24xf32>
    tpu.vector_store %arg5[%c0_10, %c0_11], %7 {strides = array<i32>} : memref<3x24xf32, #tpu.memory_space<vmem>>, vector<3x24xf32>,
    return
  }
}

</mosaic_0001>

<bundles_post_ra>
// kernel: tpu_custom_call.1
= control target key start
LH: loop header
LB: loop body
LE: loop exit
PB: predicated region body
PF: predicated region fallthrough
CT: control target
= control target key end

     0   :  { %11 = vsyncpa [#allocation3], 0  ;;  %vm73_vm0 = vcmask 1046528   ;;  %vm69_vm1 = vcmask 244736   ;;  %s737_s0 = inlined_call_operand.vmem [shape: f32[3,512], index: 0, kind: input, shape index: {}]   ;;  %s738_s1 = inlined_call_operand.vmem [shape: bf16[30,512], index: 1, kind: input, shape index: {}]   ;;  %s739_s2 = inlined_call_operand.vmem [shape: bf16[3,30], index: 2, kind: input, shape index: {}]   ;;  %s740_s3 = inlined_call_operand.vmem [shape: f32[512,24], index: 3, kind: input, shape index: {}]   ;;  %s741_s4 = inlined_call_operand.hbm [shape: f32[3,512], index: 4, kind: output, shape index: {0}]   ;;  %s742_s5 = inlined_call_operand.hbm [shape: f32[3,24], index: 5, kind: output, shape index: {1}]  }
   0x1   :  { %v370_v0 = vld [vmem:[%s738_s1 + $0x28] sm:$0xf]  ;;  %v387_v1 = vld [vmem:[%s738_s1 + $0x34] sm:$0x70]  ;;  %v385_v3 = vld [vmem:[%s738_s1 + $0x2c] sm:$0xf] }
   0x2   :  { %v371_v2 = vor.u32 %v387_v1, %v370_v0  ;;  %v372_v4 = vld [vmem:[%s738_s1 + $0x38] sm:$0x70]  ;;  %v384_v5 = vld [vmem:[%s738_s1 + $0x24] sm:$0xf]  ;;  %v364_v7 = vld [vmem:[%s738_s1 + $0x30] sm:$0x70] }
   0x3   :  { %v375_v6 = vor.u32 %v385_v3, %v372_v4  ;;  %v362_v8 = vld [vmem:[%s738_s1 + $0x20] sm:$0xf]  ;;  %v386_v9 = vld [vmem:[%s738_s1 + $0x2c] sm:$0x70]  ;;  %v367_v11 = vor.u32 %v384_v5, %v364_v7  ;;  %v354_v13 = vld [vmem:[%s738_s1 + $0x8] sm:$0xf] }
   0x4   :  { %v81_v10 = vsel %vm73_vm0, %v371_v2, 0  ;;  %v363_v12 = vor.u32 %v386_v9, %v362_v8  ;;  %v383_v14 = vld [vmem:[%s738_s1 + $0x14] sm:$0xf0]  ;;  %v381_v17 = vld [vmem:[%s738_s1 + $0xc] sm:$0xf]  ;;  %v199_v31 = vld [vmem:[%s740_s3 + $0x170] sm:$0xff] }
   0x5   :  { %118 = vmatpush.bf16.msra.mxu2 %v81_v10  ;;  %v84_v15 = vsel %vm73_vm0, %v375_v6, 0  ;;  %v355_v16 = vor.u32 %v383_v14, %v354_v13  ;;  %v356_v18 = vld [vmem:[%s738_s1 + $0x18] sm:$0xf0]  ;;  %v78_v19 = vsel %vm73_vm0, %v367_v11, 0  ;;  %v380_v22 = vld [vmem:[%s738_s1 + $0x4] sm:$0xf] }
   0x6   :  { %131 = vmatpush.bf16.msra.mxu3 %v84_v15  ;;  %v75_v20 = vsel %vm73_vm0, %v363_v12, 0  ;;  %v359_v21 = vor.u32 %v381_v17, %v356_v18  ;;  %v348_v23 = vld [vmem:[%s738_s1 + $0x10] sm:$0xf0]  ;;  %105 = vmatpush.bf16.msra.mxu1 %v78_v19  ;;  %v346_v25 = vld [vmem:[%s738_s1] sm:$0xf]  ;;  %v200_v27 = vld [vmem:[%s740_s3 + $0x178] sm:$0xff] }
   0x7   :  { %92 = vmatpush.bf16.msra.mxu0 %v75_v20  ;;  %v351_v24 = vor.u32 %v380_v22, %v348_v23  ;;  %v382_v26 = vld [vmem:[%s738_s1 + $0xc] sm:$0xf0]  ;;  %v24_v29 = vld [vmem:[%s739_s2] sm:$0x3]  ;;  %v216_v30 = vld [vmem:[%s740_s3 + $0x1f8] sm:$0xff] }
   0x8   :  { %v347_v28 = vor.u32 %v382_v26, %v346_v25  ;;  %v215_v32 = vld [vmem:[%s740_s3 + $0x1f0] sm:$0xff]  ;;  %v168_v33 = vld [vmem:[%s740_s3 + $0x78] sm:$0xff]  ;;  %v198_v35 = vld [vmem:[%s740_s3 + $0x168] sm:$0xff] }
   0x9   :  { %119 = vmatpush.bf16.msra.mxu2 %v355_v16  ;;  %v184_v34 = vld [vmem:[%s740_s3 + $0xf8] sm:$0xff]  ;;  %v214_v36 = vld [vmem:[%s740_s3 + $0x1e8] sm:$0xff]  ;;  %v167_v37 = vld [vmem:[%s740_s3 + $0x70] sm:$0xff] }
   0xa   :  { %132 = vmatpush.bf16.msra.mxu3 %v359_v21  ;;  %106 = vmatpush.bf16.msra.mxu1 %v351_v24  ;;  %v183_v38 = vld [vmem:[%s740_s3 + $0xf0] sm:$0xff]  ;;  %v197_v39 = vld [vmem:[%s740_s3 + $0x160] sm:$0xff] }
   0xb   :  { %93 = vmatpush.bf16.msra.mxu0 %v347_v28 }
   0xc   :  { %378 = vmatmul.msk.bf16.vlgmr.msra.gmra.mxu2 %vm69_vm1, %v24_v29 }
   0xd   :  { %270 = vmatpush.msrb.mxu2 %v200_v27  ;;  %379 = vmatmul.msk.bf16.vlgmr.msra.gmra.mxu3 %vm69_vm1, %v24_v29 }
   0xe   :  { %290 = vmatpush.msrb.mxu3 %v216_v30  ;;  %377 = vmatmul.msk.bf16.vlgmr.msra.gmra.mxu1 %vm69_vm1, %v24_v29 }
   0xf   :  { %271 = vmatpush.msrb.mxu2 %v199_v31  ;;  %376 = vmatmul.msk.bf16.vlgmr.msra.gmra.mxu0 %vm69_vm1, %v24_v29 }
  0x10   :  { %291 = vmatpush.msrb.mxu3 %v215_v32  ;;  %230 = vmatpush.msrb.mxu0 %v168_v33 }
  0x11   :  { %12 = vsyncpa [#allocation5], 0  ;;  %250 = vmatpush.msrb.mxu1 %v184_v34  ;;  %272 = vmatpush.msrb.mxu2 %v198_v35  ;;  %v213_v40 = vld [vmem:[%s740_s3 + $0x1e0] sm:$0xff]  ;;  %v166_v41 = vld [vmem:[%s740_s3 + $0x68] sm:$0xff]  ;;  %vm144_vm2 = vcmask 1043456   ;;  %s319_s26 = sshll.u32 %s741_s4, 4  ;;  %s320_s26 = int_to_ptr.hbm [resolvable:$true] %s319_s26 }
  0x12   :  { %292 = vmatpush.msrb.mxu3 %v214_v36  ;;  %231 = vmatpush.msrb.mxu0 %v167_v37  ;;  %v182_v42 = vld [vmem:[%s740_s3 + $0xe8] sm:$0xff]  ;;  %v196_v43 = vld [vmem:[%s740_s3 + $0x158] sm:$0xff]  ;;  %v165_v45 = vld [vmem:[%s740_s3 + $0x60] sm:$0xff]  ;;  %s443_s27 = smov [#allocation4]   ;;  %s330_s6 = sshll.u32 %s742_s5, 4  ;;  %vm310_vm3 = vcmask 190464   ;;  %s331_s6 = int_to_ptr.hbm [resolvable:$true] %s330_s6 }
  0x13   :  { %251 = vmatpush.msrb.mxu1 %v183_v38  ;;  %273 = vmatpush.msrb.mxu2 %v197_v39  ;;  %v212_v44 = vld [vmem:[%s740_s3 + $0x1d8] sm:$0xff]  ;;  %v181_v46 = vld [vmem:[%s740_s3 + $0xe0] sm:$0xff]  ;;  %v195_v47 = vld [vmem:[%s740_s3 + $0x150] sm:$0xff]  ;;  %s328_s28 = sshll.u32 %s443_s27, 4  ;;  %s329_s28 = int_to_ptr.vmem [resolvable:$true] %s328_s28 }
  0x14   :  { %293 = vmatpush.msrb.mxu3 %v213_v40  ;;  %232 = vmatpush.msrb.mxu0 %v166_v41  ;;  %v211_v48 = vld [vmem:[%s740_s3 + $0x1d0] sm:$0xff]  ;;  %v164_v49 = vld [vmem:[%s740_s3 + $0x58] sm:$0xff]  ;;  %v194_v51 = vld [vmem:[%s740_s3 + $0x148] sm:$0xff] }
  0x15   :  { %252 = vmatpush.msrb.mxu1 %v182_v42  ;;  %274 = vmatpush.msrb.mxu2 %v196_v43  ;;  %v180_v50 = vld [vmem:[%s740_s3 + $0xd8] sm:$0xff]  ;;  %v210_v52 = vld [vmem:[%s740_s3 + $0x1c8] sm:$0xff]  ;;  %v163_v53 = vld [vmem:[%s740_s3 + $0x50] sm:$0xff] }
  0x16   :  { %294 = vmatpush.msrb.mxu3 %v212_v44  ;;  %233 = vmatpush.msrb.mxu0 %v165_v45  ;;  %v179_v54 = vld [vmem:[%s740_s3 + $0xd0] sm:$0xff]  ;;  %v193_v55 = vld [vmem:[%s740_s3 + $0x140] sm:$0xff]  ;;  %v162_v57 = vld [vmem:[%s740_s3 + $0x48] sm:$0xff] }
  0x17   :  { %253 = vmatpush.msrb.mxu1 %v181_v46  ;;  %275 = vmatpush.msrb.mxu2 %v195_v47  ;;  %v209_v56 = vld [vmem:[%s740_s3 + $0x1c0] sm:$0xff]  ;;  %v178_v58 = vld [vmem:[%s740_s3 + $0xc8] sm:$0xff]  ;;  %v192_v59 = vld [vmem:[%s740_s3 + $0x138] sm:$0xff] }
  0x18   :  { %295 = vmatpush.msrb.mxu3 %v211_v48  ;;  %234 = vmatpush.msrb.mxu0 %v164_v49  ;;  %v208_v60 = vld [vmem:[%s740_s3 + $0x1b8] sm:$0xff]  ;;  %v161_v61 = vld [vmem:[%s740_s3 + $0x40] sm:$0xff]  ;;  %v191_v63 = vld [vmem:[%s740_s3 + $0x130] sm:$0xff] }
  0x19   :  { %254 = vmatpush.msrb.mxu1 %v180_v50  ;;  %276 = vmatpush.msrb.mxu2 %v194_v51  ;;  %v177_v62 = vld [vmem:[%s740_s3 + $0xc0] sm:$0xff]  ;;  %v207_v0 = vld [vmem:[%s740_s3 + $0x1b0] sm:$0xff]  ;;  %v160_v1 = vld [vmem:[%s740_s3 + $0x38] sm:$0xff] }
  0x1a   :  { %296 = vmatpush.msrb.mxu3 %v210_v52  ;;  %235 = vmatpush.msrb.mxu0 %v163_v53  ;;  %v176_v2 = vld [vmem:[%s740_s3 + $0xb8] sm:$0xff]  ;;  %v190_v3 = vld [vmem:[%s740_s3 + $0x128] sm:$0xff]  ;;  %v159_v5 = vld [vmem:[%s740_s3 + $0x30] sm:$0xff] }
  0x1b   :  { %255 = vmatpush.msrb.mxu1 %v179_v54  ;;  %277 = vmatpush.msrb.mxu2 %v193_v55  ;;  %v206_v4 = vld [vmem:[%s740_s3 + $0x1a8] sm:$0xff]  ;;  %v175_v6 = vld [vmem:[%s740_s3 + $0xb0] sm:$0xff]  ;;  %v189_v7 = vld [vmem:[%s740_s3 + $0x120] sm:$0xff] }
  0x1c   :  { %297 = vmatpush.msrb.mxu3 %v209_v56  ;;  %236 = vmatpush.msrb.mxu0 %v162_v57  ;;  %v205_v8 = vld [vmem:[%s740_s3 + $0x1a0] sm:$0xff]  ;;  %v158_v9 = vld [vmem:[%s740_s3 + $0x28] sm:$0xff]  ;;  %v188_v11 = vld [vmem:[%s740_s3 + $0x118] sm:$0xff] }
  0x1d   :  { %256 = vmatpush.msrb.mxu1 %v178_v58  ;;  %278 = vmatpush.msrb.mxu2 %v192_v59  ;;  %v174_v10 = vld [vmem:[%s740_s3 + $0xa8] sm:$0xff]  ;;  %v204_v12 = vld [vmem:[%s740_s3 + $0x198] sm:$0xff]  ;;  %v157_v13 = vld [vmem:[%s740_s3 + $0x20] sm:$0xff] }
  0x1e   :  { %298 = vmatpush.msrb.mxu3 %v208_v60  ;;  %237 = vmatpush.msrb.mxu0 %v161_v61  ;;  %v173_v14 = vld [vmem:[%s740_s3 + $0xa0] sm:$0xff]  ;;  %v187_v15 = vld [vmem:[%s740_s3 + $0x110] sm:$0xff]  ;;  %v156_v17 = vld [vmem:[%s740_s3 + $0x18] sm:$0xff] }
  0x1f   :  { %257 = vmatpush.msrb.mxu1 %v177_v62  ;;  %279 = vmatpush.msrb.mxu2 %v191_v63  ;;  %v203_v16 = vld [vmem:[%s740_s3 + $0x190] sm:$0xff]  ;;  %v172_v18 = vld [vmem:[%s740_s3 + $0x98] sm:$0xff]  ;;  %v186_v19 = vld [vmem:[%s740_s3 + $0x108] sm:$0xff] }
  0x20   :  { %299 = vmatpush.msrb.mxu3 %v207_v0  ;;  %238 = vmatpush.msrb.mxu0 %v160_v1  ;;  %v202_v20 = vld [vmem:[%s740_s3 + $0x188] sm:$0xff]  ;;  %v155_v21 = vld [vmem:[%s740_s3 + $0x10] sm:$0xff]  ;;  %v185_v23 = vld [vmem:[%s740_s3 + $0x100] sm:$0xff] }
  0x21   :  { %258 = vmatpush.msrb.mxu1 %v176_v2  ;;  %280 = vmatpush.msrb.mxu2 %v190_v3  ;;  %v171_v22 = vld [vmem:[%s740_s3 + $0x90] sm:$0xff]  ;;  %v201_v24 = vld [vmem:[%s740_s3 + $0x180] sm:$0xff]  ;;  %v154_v25 = vld [vmem:[%s740_s3 + $0x8] sm:$0xff] }
  0x22   :  { %300 = vmatpush.msrb.mxu3 %v206_v4  ;;  %239 = vmatpush.msrb.mxu0 %v159_v5  ;;  %v170_v26 = vld [vmem:[%s740_s3 + $0x88] sm:$0xff]  ;;  %v153_v27 = vld [vmem:[%s740_s3] sm:$0xff] }
  0x23   :  { %259 = vmatpush.msrb.mxu1 %v175_v6  ;;  %281 = vmatpush.msrb.mxu2 %v189_v7  ;;  %v169_v28 = vld [vmem:[%s740_s3 + $0x80] sm:$0xff]  ;;  %v23_v37 = vld [vmem:[%s737_s0 + $0x8] sm:$0x77]  ;;  %s442_s3 = smov [#allocation2]  }
  0x24   :  { %301 = vmatpush.msrb.mxu3 %v205_v8  ;;  %240 = vmatpush.msrb.mxu0 %v158_v9  ;;  %v22_v32 = vld [vmem:[%s737_s0] sm:$0x77]  ;;  %s317_s0 = sshll.u32 %s442_s3, 4  ;;  %s318_s0 = int_to_ptr.vmem [resolvable:$true] %s317_s0 }
  0x25   :  { %260 = vmatpush.msrb.mxu1 %v174_v10  ;;  %282 = vmatpush.msrb.mxu2 %v188_v11 }
  0x26   :  { %302 = vmatpush.msrb.mxu3 %v204_v12  ;;  %241 = vmatpush.msrb.mxu0 %v157_v13 }
  0x27   :  { %261 = vmatpush.msrb.mxu1 %v173_v14  ;;  %283 = vmatpush.msrb.mxu2 %v187_v15 }
  0x28   :  { %303 = vmatpush.msrb.mxu3 %v203_v16  ;;  %242 = vmatpush.msrb.mxu0 %v156_v17 }
  0x29   :  { %262 = vmatpush.msrb.mxu1 %v172_v18  ;;  %284 = vmatpush.msrb.mxu2 %v186_v19 }
  0x2a   :  { %304 = vmatpush.msrb.mxu3 %v202_v20  ;;  %243 = vmatpush.msrb.mxu0 %v155_v21 }
  0x2b   :  { %263 = vmatpush.msrb.mxu1 %v171_v22  ;;  %285 = vmatpush.msrb.mxu2 %v185_v23 }
  0x2c   :  { %305 = vmatpush.msrb.mxu3 %v201_v24  ;;  %244 = vmatpush.msrb.mxu0 %v154_v25 }
  0x2d   :  { %264 = vmatpush.msrb.mxu1 %v170_v26 }
  0x2e   :  { %245 = vmatpush.msrb.mxu0 %v153_v27 }
  0x2f   :  { %265 = vmatpush.msrb.mxu1 %v169_v28 }
  0x8b   :  { %v108_v29 = vpop.f32.mrf.mxu1 }
  0x8c   :  { %v95_v30 = vpop.f32.mrf.mxu0  ;;  %v142_v31 = vrot.slane %v108_v29, 4 }
  0x8e   :  { %v145_v33 = vsel %vm144_vm2, %v95_v30, %v142_v31 }
  0x8f   :  { %v149_v34 = vadd.f32 %v145_v33, %v22_v32  ;;  %v121_v35 = vpop.f32.mrf.mxu2 }
  0x90   :  { %v134_v36 = vpop.f32.mrf.mxu3 }
  0x91   :  { %219 = vst [vmem:[#allocation1] ss:$2 sm:$0xff] %v149_v34  ;;  %v143_v38 = vrot.slane %v134_v36, 4 }
  0x92   :  { %151 = vst [vmem:[#allocation2] sm:$0x77] %v149_v34 }
  0x93   :  { %v146_v39 = vsel %vm144_vm2, %v121_v35, %v143_v38  ;;  %v110_v40 = vpop.f32.mrf.mxu1 }
  0x94   :  { %v97_v41 = vpop.f32.mrf.mxu0  ;;  %v150_v42 = vadd.f32 %v146_v39, %v23_v37 }
  0x96   :  { %221 = vst [vmem:[#allocation1 + $0x10] ss:$2 sm:$0xff] %v150_v42 }
  0x97   :  { %152 = vst [vmem:[#allocation2 + $0x8] sm:$0x77] %v150_v42  ;;  %v123_v43 = vpop.f32.mrf.mxu2 }
  0x98   :  { %v136_v44 = vpop.f32.mrf.mxu3  ;;  %v222_v45 = vld.sshfl [vmem:[#allocation1] sm:$0xff pattern:$0x75316420]  ;;  %v223_v46 = vld.sshfl [vmem:[#allocation1 + $0x8] sm:$0xff pattern:$0x75316420] }
  0x99   :  { %246 = vmatmul.f32.vlgmr.msrb.gmra.mxu0 %v222_v45  ;;  %266 = vmatmul.f32.vlgmr.msrb.gmra.mxu1 %v223_v46  ;;  %322 = dma.vmem_to_hbm [thread:$0]  %s318_s0, 256, %s320_s26, [#allocation3]  }
  0x9d   :  { %v224_v47 = vld.sshfl [vmem:[#allocation1 + $0x10] sm:$0xff pattern:$0x75316420]  ;;  %v225_v48 = vld.sshfl [vmem:[#allocation1 + $0x18] sm:$0xff pattern:$0x75316420] }
  0x9e   :  { %286 = vmatmul.f32.vlgmr.msrb.gmra.mxu2 %v224_v47  ;;  %306 = vmatmul.f32.vlgmr.msrb.gmra.mxu3 %v225_v48 }
 0x116   :  { %v247_v49 = vpop.f32.mrf.mxu0  ;;  %v267_v50 = vpop.f32.mrf.mxu1 }
 0x117   :  { %v268_v51 = vadd.f32 %v267_v50, %v247_v49 }
 0x121   :  { %v287_v52 = vpop.f32.mrf.mxu2  ;;  %v307_v54 = vpop.f32.mrf.mxu3 }
 0x122   :  { %v288_v53 = vadd.f32 %v287_v52, %v268_v51 }
 0x124   :  { %v308_v55 = vadd.f32 %v307_v54, %v288_v53 }
 0x126   :  { %311 = vst.msk [vmem:[#allocation4] sm:$0x7] %vm310_vm3, %v308_v55 }
 0x127   :  { %333 = dma.vmem_to_hbm [thread:$0]  %s329_s28, 64, %s331_s6, [#allocation5]  }
 0x128   :  { %438 = dma.done.wait [#allocation3], 256  }
 0x129   :  { %439 = vsyncadd [#allocation3], 4294967040 }
 0x12a   :  { %440 = dma.done.wait [#allocation5], 64  }
 0x12b   :  { %441 = vsyncadd [#allocation5], 4294967232 }
 0x12c   :  { %342 = vsyncpa [#allocation3], 1 }
 0x12d   :  { %343 = vsyncpa [#allocation5], 1 }

</bundles_post_ra>
